<compile_context>
chip_gen: v5e
topology: v5e:2x2
jax: 0.10.0
libtpu: 0.0.40
codegen_flags: <defaults>
</compile_context>

<pallas_src>
import functools

import numpy as np
import jax
import jax.numpy as jnp
from jax import lax
from jax.experimental import pallas as pl
from jax.experimental.pallas import tpu as pltpu


def _query_and_group_kernel(new_ref, newt_ref, xyzt_ref, pd_ref, out_ref, *,
                            radius2, nsample, recenter_xyz):
    """One (batch, query-tile) block.

    new_ref : (1, Pt, 3)  query centers, row-major (distance broadcast source)
    newt_ref: (1, 3, Pt)  query centers, coordinate-major (re-centering)
    xyzt_ref: (1, 3, N)   point coordinates, coordinate-major (distances)
    pd_ref  : (1, D, N)   rows to gather: [xyz^T; features], xyz^T, or features
    out_ref : (1, S, D, Pt)
    """
    new_xyz = new_ref[0]          # (Pt, 3)
    xyz_t = xyzt_ref[0]           # (3, N)
    pd = pd_ref[0]                # (D, N)
    Pt = new_xyz.shape[0]
    N = pd.shape[1]
    D = pd.shape[0]

    # --- squared distances: sum_c (a_c - b_c)^2 (pure VPU) ---------------------
    d2 = jnp.zeros((Pt, N), jnp.float32)
    for c in range(3):
        diff = new_xyz[:, c:c + 1] - xyz_t[c:c + 1, :]     # (Pt,1)-(1,N) -> (Pt,N)
        d2 = d2 + diff * diff
    within = d2 < radius2                                   # strict '<' (CUDA semantics)
    wf = within.astype(jnp.float32)

    # --- inclusive prefix sum along N (lanes): Hillis-Steele, log2(N) steps ----
    run = wf
    shift = 1
    while shift < N:
        shifted = jnp.concatenate(
            [jnp.zeros((Pt, shift), jnp.float32), run[:, :N - shift]], axis=1)
        run = run + shifted
        shift *= 2
    # exclusive rank of each in-radius point, -1 for misses
    rank_sel = jnp.where(within, run - 1.0, -1.0)           # (Pt, N)

    # --- one transpose so every gather matmul / store is lane-dense in Pt ------
    rank_t = jnp.transpose(rank_sel)                        # (N, Pt)
    cnt = jnp.max(rank_t, axis=0, keepdims=True) + 1.0      # (1, Pt) hits per query
    # queries with no hit fall back to point 0: give row 0 rank 0 for those cols
    row_is0 = lax.broadcasted_iota(jnp.int32, (N, Pt), 0) == 0
    rank_eff = jnp.where(jnp.logical_and(row_is0, cnt <= 0.0), 0.0, rank_t)

    if recenter_xyz:
        new_t = newt_ref[0]                                 # (3, Pt)

    # --- gather: one (D, N) x (N, Pt) MXU matmul per sample slot ---------------
    # Hot-loop select is only compare + convert on (N, Pt); the CUDA fallback
    # semantics live entirely in the tiny (1, Pt) s_eff vector.
    for s in range(nsample):
        s_eff = jnp.where(cnt > float(s), float(s), 0.0)          # (1, Pt)
        sel = (rank_eff == s_eff).astype(jnp.float32)             # (N, Pt) one-hot
        g = jnp.dot(pd, sel, preferred_element_type=jnp.float32)  # (D, Pt)
        if recenter_xyz:
            # re-center only the 3 xyz rows; each output row stored exactly once
            out_ref[0, s, 0:3, :] = (g[0:3, :] - new_t).astype(out_ref.dtype)
            if D > 3:
                out_ref[0, s, 3:, :] = g[3:, :].astype(out_ref.dtype)
        else:
            out_ref[0, s] = g.astype(out_ref.dtype)


def query_and_group(xyz, new_xyz, features=None, *, radius, nsample,
                    use_xyz=True, p_tile=None):
    """JAX/Pallas equivalent of QueryAndGroup.forward.

    Returns (B, 3+C, npoint, nsample) if features is not None and use_xyz,
            (B, C,   npoint, nsample) if features is not None and not use_xyz,
            (B, 3,   npoint, nsample) if features is None (use_xyz must be True).
    """
    B, N, _ = xyz.shape
    P = new_xyz.shape[1]
    only_xyz = features is None
    if only_xyz:
        assert use_xyz, "Cannot have not features and not use xyz as a feature!"

    xyz = xyz.astype(jnp.float32)
    new_xyz = new_xyz.astype(jnp.float32)

    xyz_t = jnp.transpose(xyz, (0, 2, 1))                    # (B, 3, N)  distances
    new_t = jnp.transpose(new_xyz, (0, 2, 1))                # (B, 3, P)  recentering

    # Rows to gather (channel-major). use_xyz=False gathers features only, so the
    # kernel never produces xyz rows that would need to be sliced away afterwards.
    if only_xyz:
        pd, recenter = xyz_t, True
    elif use_xyz:
        pd = jnp.concatenate([xyz_t, features.astype(jnp.float32)], axis=1)
        recenter = True
    else:
        pd, recenter = features.astype(jnp.float32), False
    D = pd.shape[1]

    # P tiling bounds all (Pt, N)/(N, Pt)/(D, Pt) intermediates and pipelines over
    # query tiles.  128 is safe on every generation (v5e included); pass
    # p_tile=256 on v6e/v7x for wider MXU output tiles when P allows it.
    if p_tile is None:
        p_tile = 128 if P % 128 == 0 else P
    assert P % p_tile == 0, (P, p_tile)
    grid = (B, P // p_tile)

    kernel = functools.partial(_query_and_group_kernel,
                               radius2=float(radius) * float(radius),
                               nsample=int(nsample),
                               recenter_xyz=recenter)

    out = pl.pallas_call(
        kernel,
        out_shape=jax.ShapeDtypeStruct((B, nsample, D, P), jnp.float32),
        grid=grid,
        in_specs=[
            pl.BlockSpec((1, p_tile, 3), lambda b, q: (b, q, 0)),
            pl.BlockSpec((1, 3, p_tile), lambda b, q: (b, 0, q)),
            pl.BlockSpec((1, 3, N), lambda b, q: (b, 0, 0)),
            pl.BlockSpec((1, D, N), lambda b, q: (b, 0, 0)),
        ],
        out_specs=pl.BlockSpec((1, nsample, D, p_tile), lambda b, q: (b, 0, 0, q)),
        compiler_params=pltpu.CompilerParams(
            dimension_semantics=("parallel", "parallel"),
            vmem_limit_bytes=48 * 1024 * 1024),
    )(new_xyz, new_t, xyz_t, pd)

    # (B, S, D, P) -> (B, D, P, S)  (PyTorch NCHW-style output).
    # TODO(synk): folding this final permute into the kernel would need width-S
    # (sub-128-lane) strided stores; at realistic sizes the kernel is MXU-bound,
    # so the XLA transpose pass is minor and left as-is.
    return jnp.transpose(out, (0, 2, 3, 1))


def _reference_numpy(xyz, new_xyz, features, radius, nsample, use_xyz=True):
    """Loop reference reproducing the CUDA ball_query + group_points semantics."""
    xyz = np.asarray(xyz); new_xyz = np.asarray(new_xyz); features = np.asarray(features)
    B, N, _ = xyz.shape
    P = new_xyz.shape[1]
    C = features.shape[1]
    idx = np.zeros((B, P, nsample), dtype=np.int32)
    r2 = radius * radius
    for b in range(B):
        for m in range(P):
            cnt = 0
            for k in range(N):
                d2 = float(np.sum((new_xyz[b, m] - xyz[b, k]) ** 2))
                if d2 < r2:
                    if cnt == 0:
                        idx[b, m, :] = k
                    idx[b, m, cnt] = k
                    cnt += 1
                    if cnt >= nsample:
                        break
    g_xyz = np.zeros((B, 3, P, nsample), np.float32)
    g_feat = np.zeros((B, C, P, nsample), np.float32)
    for b in range(B):
        for m in range(P):
            for s in range(nsample):
                k = idx[b, m, s]
                g_xyz[b, :, m, s] = xyz[b, k] - new_xyz[b, m]
                g_feat[b, :, m, s] = features[b, :, k]
    return np.concatenate([g_xyz, g_feat], axis=1) if use_xyz else g_feat


if __name__ == "__main__":
    B, N, P, C = 2, 16, 8, 4
    RADIUS, NSAMPLE = 0.4, 4

    key = jax.random.PRNGKey(0)
    k1, k2 = jax.random.split(key)
    xyz = jax.random.uniform(k1, (B, N, 3), dtype=jnp.float32)        # (B, N, 3)
    new_xyz = xyz[:, :P, :]                                           # centers = subset
    features = jax.random.normal(k2, (B, C, N), dtype=jnp.float32)    # (B, C, N)

    ref = _reference_numpy(xyz, new_xyz, features, RADIUS, NSAMPLE, use_xyz=True)

    # use_xyz=True (xyz + features)
    out = query_and_group(xyz, new_xyz, features,
                          radius=RADIUS, nsample=NSAMPLE, use_xyz=True)
    out = jax.block_until_ready(out)
    assert out.shape == (B, 3 + C, P, NSAMPLE), out.shape
    np.testing.assert_allclose(np.asarray(out), ref, atol=1e-5, rtol=1e-5)

    # use_xyz=False (features only)
    out_nf = query_and_group(xyz, new_xyz, features,
                             radius=RADIUS, nsample=NSAMPLE, use_xyz=False)
    out_nf = jax.block_until_ready(out_nf)
    assert out_nf.shape == (B, C, P, NSAMPLE), out_nf.shape
    np.testing.assert_allclose(np.asarray(out_nf), ref[:, 3:], atol=1e-5, rtol=1e-5)

    # features=None path (xyz-only grouping)
    out_xyz = query_and_group(xyz, new_xyz, None,
                              radius=RADIUS, nsample=NSAMPLE, use_xyz=True)
    out_xyz = jax.block_until_ready(out_xyz)
    assert out_xyz.shape == (B, 3, P, NSAMPLE), out_xyz.shape
    np.testing.assert_allclose(np.asarray(out_xyz), ref[:, :3], atol=1e-5, rtol=1e-5)

    print("KERNEL_OK")
</pallas_src>

<mosaic_0001>
module attributes {stable_mosaic.version = 11 : i64} {
  func.func @_query_and_group_kernel(%arg0: i32, %arg1: i32, %arg2: memref<1x8x3xf32, #tpu.memory_space<vmem>>, %arg3: memref<1x3x8xf32, #tpu.memory_space<vmem>>, %arg4: memref<1x3x16xf32, #tpu.memory_space<vmem>>, %arg5: memref<1x7x16xf32, #tpu.memory_space<vmem>>, %arg6: memref<1x4x7x8xf32, #tpu.memory_space<vmem>>) attributes {dimension_semantics = [#tpu.dimension_semantics<parallel>, #tpu.dimension_semantics<parallel>], iteration_bounds = array<i64: 2, 1>, scalar_prefetch = 0 : i64, scratch_operands = 0 : i64, tpu.core_type = #tpu.core_type<tc>, window_params = [{transform_indices = @transform_0, window_bounds = array<i64: 1, 8, 3>}, {transform_indices = @transform_1, window_bounds = array<i64: 1, 3, 8>}, {transform_indices = @transform_2, window_bounds = array<i64: 1, 3, 16>}, {transform_indices = @transform_3, window_bounds = array<i64: 1, 7, 16>}, {transform_indices = @transform_4, window_bounds = array<i64: 1, 4, 7, 8>}]} {
    %c0 = arith.constant 0 : index
    %c0_0 = arith.constant 0 : index
    %c0_1 = arith.constant 0 : index
    %0 = vector.load %arg2[%c0, %c0_0, %c0_1] : memref<1x8x3xf32, #tpu.memory_space<vmem>>, vector<1x8x3xf32>
    %1 = vector.shape_cast %0 : vector<1x8x3xf32> to vector<8x3xf32>
    %c0_2 = arith.constant 0 : index
    %c0_3 = arith.constant 0 : index
    %c0_4 = arith.constant 0 : index
    %2 = vector.load %arg4[%c0_2, %c0_3, %c0_4] : memref<1x3x16xf32, #tpu.memory_space<vmem>>, vector<1x3x16xf32>
    %3 = vector.shape_cast %2 : vector<1x3x16xf32> to vector<3x16xf32>
    %c0_5 = arith.constant 0 : index
    %c0_6 = arith.constant 0 : index
    %c0_7 = arith.constant 0 : index
    %4 = vector.load %arg5[%c0_5, %c0_6, %c0_7] : memref<1x7x16xf32, #tpu.memory_space<vmem>>, vector<1x7x16xf32>
    %5 = vector.shape_cast %4 : vector<1x7x16xf32> to vector<7x16xf32>
    %cst = arith.constant 0.000000e+00 : f32
    %6 = vector.broadcast %cst : f32 to vector<8x16xf32>
    %7 = vector.extract_strided_slice %1 {offsets = [0, 0], sizes = [8, 1], strides = [1, 1]} : vector<8x3xf32> to vector<8x1xf32>
    %8 = vector.extract_strided_slice %3 {offsets = [0, 0], sizes = [1, 16], strides = [1, 1]} : vector<3x16xf32> to vector<1x16xf32>
    %9 = vector.broadcast %7 : vector<8x1xf32> to vector<8x16xf32>
    %10 = vector.broadcast %8 : vector<1x16xf32> to vector<8x16xf32>
    %11 = arith.subf %9, %10 : vector<8x16xf32>
    %12 = arith.mulf %11, %11 : vector<8x16xf32>
    %13 = arith.addf %6, %12 : vector<8x16xf32>
    %14 = vector.extract_strided_slice %1 {offsets = [0, 1], sizes = [8, 1], strides = [1, 1]} : vector<8x3xf32> to vector<8x1xf32>
    %15 = vector.extract_strided_slice %3 {offsets = [1, 0], sizes = [1, 16], strides = [1, 1]} : vector<3x16xf32> to vector<1x16xf32>
    %16 = vector.broadcast %14 : vector<8x1xf32> to vector<8x16xf32>
    %17 = vector.broadcast %15 : vector<1x16xf32> to vector<8x16xf32>
    %18 = arith.subf %16, %17 : vector<8x16xf32>
    %19 = arith.mulf %18, %18 : vector<8x16xf32>
    %20 = arith.addf %13, %19 : vector<8x16xf32>
    %21 = vector.extract_strided_slice %1 {offsets = [0, 2], sizes = [8, 1], strides = [1, 1]} : vector<8x3xf32> to vector<8x1xf32>
    %22 = vector.extract_strided_slice %3 {offsets = [2, 0], sizes = [1, 16], strides = [1, 1]} : vector<3x16xf32> to vector<1x16xf32>
    %23 = vector.broadcast %21 : vector<8x1xf32> to vector<8x16xf32>
    %24 = vector.broadcast %22 : vector<1x16xf32> to vector<8x16xf32>
    %25 = arith.subf %23, %24 : vector<8x16xf32>
    %26 = arith.mulf %25, %25 : vector<8x16xf32>
    %27 = arith.addf %20, %26 : vector<8x16xf32>
    %cst_8 = arith.constant 1.600000e-01 : f32
    %28 = vector.broadcast %cst_8 : f32 to vector<8x16xf32>
    %29 = arith.cmpf olt, %27, %28 : vector<8x16xf32>
    %30 = arith.extui %29 : vector<8x16xi1> to vector<8x16xi32>
    %31 = arith.sitofp %30 : vector<8x16xi32> to vector<8x16xf32>
    %cst_9 = arith.constant 0.000000e+00 : f32
    %32 = vector.broadcast %cst_9 : f32 to vector<8x1xf32>
    %33 = vector.extract_strided_slice %31 {offsets = [0, 0], sizes = [8, 15], strides = [1, 1]} : vector<8x16xf32> to vector<8x15xf32>
    %34 = tpu.concatenate %32, %33 in 1 : vector<8x1xf32>, vector<8x15xf32> -> vector<8x16xf32>
    %35 = arith.addf %31, %34 : vector<8x16xf32>
    %cst_10 = arith.constant 0.000000e+00 : f32
    %36 = vector.broadcast %cst_10 : f32 to vector<8x2xf32>
    %37 = vector.extract_strided_slice %35 {offsets = [0, 0], sizes = [8, 14], strides = [1, 1]} : vector<8x16xf32> to vector<8x14xf32>
    %38 = tpu.concatenate %36, %37 in 1 : vector<8x2xf32>, vector<8x14xf32> -> vector<8x16xf32>
    %39 = arith.addf %35, %38 : vector<8x16xf32>
    %cst_11 = arith.constant 0.000000e+00 : f32
    %40 = vector.broadcast %cst_11 : f32 to vector<8x4xf32>
    %41 = vector.extract_strided_slice %39 {offsets = [0, 0], sizes = [8, 12], strides = [1, 1]} : vector<8x16xf32> to vector<8x12xf32>
    %42 = tpu.concatenate %40, %41 in 1 : vector<8x4xf32>, vector<8x12xf32> -> vector<8x16xf32>
    %43 = arith.addf %39, %42 : vector<8x16xf32>
    %cst_12 = arith.constant 0.000000e+00 : f32
    %44 = vector.broadcast %cst_12 : f32 to vector<8x8xf32>
    %45 = vector.extract_strided_slice %43 {offsets = [0, 0], sizes = [8, 8], strides = [1, 1]} : vector<8x16xf32> to vector<8x8xf32>
    %46 = tpu.concatenate %44, %45 in 1 : vector<8x8xf32>, vector<8x8xf32> -> vector<8x16xf32>
    %47 = arith.addf %43, %46 : vector<8x16xf32>
    %cst_13 = arith.constant 1.000000e+00 : f32
    %48 = vector.broadcast %cst_13 : f32 to vector<8x16xf32>
    %49 = arith.subf %47, %48 : vector<8x16xf32>
    %cst_14 = arith.constant -1.000000e+00 : f32
    %50 = vector.broadcast %cst_14 : f32 to vector<8x16xf32>
    %51 = arith.select %29, %49, %50 : vector<8x16xi1>, vector<8x16xf32>
    %52 = tpu.transpose %51, [1, 0] : vector<8x16xf32> -> vector<16x8xf32>
    %cst_15 = arith.constant dense<0xFF800000> : vector<8xf32>
    %53 = vector.multi_reduction <maximumf>, %52, %cst_15 [0] : vector<16x8xf32> to vector<8xf32>
    %54 = vector.shape_cast %53 : vector<8xf32> to vector<1x8xf32>
    %cst_16 = arith.constant 1.000000e+00 : f32
    %55 = vector.broadcast %cst_16 : f32 to vector<1x8xf32>
    %56 = arith.addf %54, %55 : vector<1x8xf32>
    %57 = tpu.iota {dimensions = array<i32: 0>} : vector<16x8xi32>
    %c0_i32 = arith.constant 0 : i32
    %58 = vector.broadcast %c0_i32 : i32 to vector<16x8xi32>
    %59 = arith.cmpi eq, %57, %58 : vector<16x8xi32>
    %cst_17 = arith.constant 0.000000e+00 : f32
    %60 = vector.broadcast %cst_17 : f32 to vector<1x8xf32>
    %61 = arith.cmpf ole, %56, %60 : vector<1x8xf32>
    %62 = vector.broadcast %61 : vector<1x8xi1> to vector<16x8xi1>
    %63 = arith.andi %59, %62 : vector<16x8xi1>
    %cst_18 = arith.constant 0.000000e+00 : f32
    %64 = vector.broadcast %cst_18 : f32 to vector<16x8xf32>
    %65 = arith.select %63, %64, %52 : vector<16x8xi1>, vector<16x8xf32>
    %c0_19 = arith.constant 0 : index
    %c0_20 = arith.constant 0 : index
    %c0_21 = arith.constant 0 : index
    %66 = vector.load %arg3[%c0_19, %c0_20, %c0_21] : memref<1x3x8xf32, #tpu.memory_space<vmem>>, vector<1x3x8xf32>
    %67 = vector.shape_cast %66 : vector<1x3x8xf32> to vector<3x8xf32>
    %cst_22 = arith.constant 0.000000e+00 : f32
    %68 = vector.broadcast %cst_22 : f32 to vector<1x8xf32>
    %69 = arith.cmpf ogt, %56, %68 : vector<1x8xf32>
    %cst_23 = arith.constant 0.000000e+00 : f32
    %cst_24 = arith.constant 0.000000e+00 : f32
    %70 = vector.broadcast %cst_23 : f32 to vector<1x8xf32>
    %71 = vector.broadcast %cst_24 : f32 to vector<1x8xf32>
    %72 = arith.select %69, %70, %71 : vector<1x8xi1>, vector<1x8xf32>
    %73 = vector.broadcast %72 : vector<1x8xf32> to vector<16x8xf32>
    %74 = arith.cmpf oeq, %65, %73 : vector<16x8xf32>
    %75 = arith.extui %74 : vector<16x8xi1> to vector<16x8xi32>
    %76 = arith.sitofp %75 : vector<16x8xi32> to vector<16x8xf32>
    %cst_25 = arith.constant dense<0.000000e+00> : vector<7x8xf32>
    %77 = tpu.matmul %5, %76, %cst_25 {dimension_numbers = #tpu.dot_dimension_numbers<[1], [0], [0], [1], [0, 0, 1, 1], [], []>} : vector<7x16xf32>, vector<16x8xf32>, vector<7x8xf32> -> vector<7x8xf32>
    %78 = vector.extract_strided_slice %77 {offsets = [0, 0], sizes = [3, 8], strides = [1, 1]} : vector<7x8xf32> to vector<3x8xf32>
    %79 = arith.subf %78, %67 : vector<3x8xf32>
    %c0_26 = arith.constant 0 : index
    %c0_27 = arith.constant 0 : index
    %c0_28 = arith.constant 0 : index
    %c0_29 = arith.constant 0 : index
    %80 = vector.load %arg6[%c0_26, %c0_27, %c0_28, %c0_29] : memref<1x4x7x8xf32, #tpu.memory_space<vmem>>, vector<1x1x3x8xf32>
    %81 = vector.shape_cast %80 : vector<1x1x3x8xf32> to vector<3x8xf32>
    %82 = vector.shape_cast %79 : vector<3x8xf32> to vector<1x1x3x8xf32>
    tpu.vector_store %arg6[%c0_26, %c0_27, %c0_28, %c0_29], %82 {strides = array<i32>} : memref<1x4x7x8xf32, #tpu.memory_space<vmem>>, vector<1x1x3x8xf32>,
    %83 = vector.extract_strided_slice %77 {offsets = [3, 0], sizes = [4, 8], strides = [1, 1]} : vector<7x8xf32> to vector<4x8xf32>
    %c0_30 = arith.constant 0 : index
    %c0_31 = arith.constant 0 : index
    %c3 = arith.constant 3 : index
    %c0_32 = arith.constant 0 : index
    %84 = vector.load %arg6[%c0_30, %c0_31, %c3, %c0_32] : memref<1x4x7x8xf32, #tpu.memory_space<vmem>>, vector<1x1x4x8xf32>
    %85 = vector.shape_cast %84 : vector<1x1x4x8xf32> to vector<4x8xf32>
    %86 = vector.shape_cast %83 : vector<4x8xf32> to vector<1x1x4x8xf32>
    tpu.vector_store %arg6[%c0_30, %c0_31, %c3, %c0_32], %86 {strides = array<i32>} : memref<1x4x7x8xf32, #tpu.memory_space<vmem>>, vector<1x1x4x8xf32>,
    %cst_33 = arith.constant 1.000000e+00 : f32
    %87 = vector.broadcast %cst_33 : f32 to vector<1x8xf32>
    %88 = arith.cmpf ogt, %56, %87 : vector<1x8xf32>
    %cst_34 = arith.constant 1.000000e+00 : f32
    %cst_35 = arith.constant 0.000000e+00 : f32
    %89 = vector.broadcast %cst_34 : f32 to vector<1x8xf32>
    %90 = vector.broadcast %cst_35 : f32 to vector<1x8xf32>
    %91 = arith.select %88, %89, %90 : vector<1x8xi1>, vector<1x8xf32>
    %92 = vector.broadcast %91 : vector<1x8xf32> to vector<16x8xf32>
    %93 = arith.cmpf oeq, %65, %92 : vector<16x8xf32>
    %94 = arith.extui %93 : vector<16x8xi1> to vector<16x8xi32>
    %95 = arith.sitofp %94 : vector<16x8xi32> to vector<16x8xf32>
    %cst_36 = arith.constant dense<0.000000e+00> : vector<7x8xf32>
    %96 = tpu.matmul %5, %95, %cst_36 {dimension_numbers = #tpu.dot_dimension_numbers<[1], [0], [0], [1], [0, 0, 1, 1], [], []>} : vector<7x16xf32>, vector<16x8xf32>, vector<7x8xf32> -> vector<7x8xf32>
    %97 = vector.extract_strided_slice %96 {offsets = [0, 0], sizes = [3, 8], strides = [1, 1]} : vector<7x8xf32> to vector<3x8xf32>
    %98 = arith.subf %97, %67 : vector<3x8xf32>
    %c0_37 = arith.constant 0 : index
    %c1 = arith.constant 1 : index
    %c0_38 = arith.constant 0 : index
    %c0_39 = arith.constant 0 : index
    %99 = vector.load %arg6[%c0_37, %c1, %c0_38, %c0_39] : memref<1x4x7x8xf32, #tpu.memory_space<vmem>>, vector<1x1x3x8xf32>
    %100 = vector.shape_cast %99 : vector<1x1x3x8xf32> to vector<3x8xf32>
    %101 = vector.shape_cast %98 : vector<3x8xf32> to vector<1x1x3x8xf32>
    tpu.vector_store %arg6[%c0_37, %c1, %c0_38, %c0_39], %101 {strides = array<i32>} : memref<1x4x7x8xf32, #tpu.memory_space<vmem>>, vector<1x1x3x8xf32>,
    %102 = vector.extract_strided_slice %96 {offsets = [3, 0], sizes = [4, 8], strides = [1, 1]} : vector<7x8xf32> to vector<4x8xf32>
    %c0_40 = arith.constant 0 : index
    %c1_41 = arith.constant 1 : index
    %c3_42 = arith.constant 3 : index
    %c0_43 = arith.constant 0 : index
    %103 = vector.load %arg6[%c0_40, %c1_41, %c3_42, %c0_43] : memref<1x4x7x8xf32, #tpu.memory_space<vmem>>, vector<1x1x4x8xf32>
    %104 = vector.shape_cast %103 : vector<1x1x4x8xf32> to vector<4x8xf32>
    %105 = vector.shape_cast %102 : vector<4x8xf32> to vector<1x1x4x8xf32>
    tpu.vector_store %arg6[%c0_40, %c1_41, %c3_42, %c0_43], %105 {strides = array<i32>} : memref<1x4x7x8xf32, #tpu.memory_space<vmem>>, vector<1x1x4x8xf32>,
    %cst_44 = arith.constant 2.000000e+00 : f32
    %106 = vector.broadcast %cst_44 : f32 to vector<1x8xf32>
    %107 = arith.cmpf ogt, %56, %106 : vector<1x8xf32>
    %cst_45 = arith.constant 2.000000e+00 : f32
    %cst_46 = arith.constant 0.000000e+00 : f32
    %108 = vector.broadcast %cst_45 : f32 to vector<1x8xf32>
    %109 = vector.broadcast %cst_46 : f32 to vector<1x8xf32>
    %110 = arith.select %107, %108, %109 : vector<1x8xi1>, vector<1x8xf32>
    %111 = vector.broadcast %110 : vector<1x8xf32> to vector<16x8xf32>
    %112 = arith.cmpf oeq, %65, %111 : vector<16x8xf32>
    %113 = arith.extui %112 : vector<16x8xi1> to vector<16x8xi32>
    %114 = arith.sitofp %113 : vector<16x8xi32> to vector<16x8xf32>
    %cst_47 = arith.constant dense<0.000000e+00> : vector<7x8xf32>
    %115 = tpu.matmul %5, %114, %cst_47 {dimension_numbers = #tpu.dot_dimension_numbers<[1], [0], [0], [1], [0, 0, 1, 1], [], []>} : vector<7x16xf32>, vector<16x8xf32>, vector<7x8xf32> -> vector<7x8xf32>
    %116 = vector.extract_strided_slice %115 {offsets = [0, 0], sizes = [3, 8], strides = [1, 1]} : vector<7x8xf32> to vector<3x8xf32>
    %117 = arith.subf %116, %67 : vector<3x8xf32>
    %c0_48 = arith.constant 0 : index
    %c2 = arith.constant 2 : index
    %c0_49 = arith.constant 0 : index
    %c0_50 = arith.constant 0 : index
    %118 = vector.load %arg6[%c0_48, %c2, %c0_49, %c0_50] : memref<1x4x7x8xf32, #tpu.memory_space<vmem>>, vector<1x1x3x8xf32>
    %119 = vector.shape_cast %118 : vector<1x1x3x8xf32> to vector<3x8xf32>
    %120 = vector.shape_cast %117 : vector<3x8xf32> to vector<1x1x3x8xf32>
    tpu.vector_store %arg6[%c0_48, %c2, %c0_49, %c0_50], %120 {strides = array<i32>} : memref<1x4x7x8xf32, #tpu.memory_space<vmem>>, vector<1x1x3x8xf32>,
    %121 = vector.extract_strided_slice %115 {offsets = [3, 0], sizes = [4, 8], strides = [1, 1]} : vector<7x8xf32> to vector<4x8xf32>
    %c0_51 = arith.constant 0 : index
    %c2_52 = arith.constant 2 : index
    %c3_53 = arith.constant 3 : index
    %c0_54 = arith.constant 0 : index
    %122 = vector.load %arg6[%c0_51, %c2_52, %c3_53, %c0_54] : memref<1x4x7x8xf32, #tpu.memory_space<vmem>>, vector<1x1x4x8xf32>
    %123 = vector.shape_cast %122 : vector<1x1x4x8xf32> to vector<4x8xf32>
    %124 = vector.shape_cast %121 : vector<4x8xf32> to vector<1x1x4x8xf32>
    tpu.vector_store %arg6[%c0_51, %c2_52, %c3_53, %c0_54], %124 {strides = array<i32>} : memref<1x4x7x8xf32, #tpu.memory_space<vmem>>, vector<1x1x4x8xf32>,
    %cst_55 = arith.constant 3.000000e+00 : f32
    %125 = vector.broadcast %cst_55 : f32 to vector<1x8xf32>
    %126 = arith.cmpf ogt, %56, %125 : vector<1x8xf32>
    %cst_56 = arith.constant 3.000000e+00 : f32
    %cst_57 = arith.constant 0.000000e+00 : f32
    %127 = vector.broadcast %cst_56 : f32 to vector<1x8xf32>
    %128 = vector.broadcast %cst_57 : f32 to vector<1x8xf32>
    %129 = arith.select %126, %127, %128 : vector<1x8xi1>, vector<1x8xf32>
    %130 = vector.broadcast %129 : vector<1x8xf32> to vector<16x8xf32>
    %131 = arith.cmpf oeq, %65, %130 : vector<16x8xf32>
    %132 = arith.extui %131 : vector<16x8xi1> to vector<16x8xi32>
    %133 = arith.sitofp %132 : vector<16x8xi32> to vector<16x8xf32>
    %cst_58 = arith.constant dense<0.000000e+00> : vector<7x8xf32>
    %134 = tpu.matmul %5, %133, %cst_58 {dimension_numbers = #tpu.dot_dimension_numbers<[1], [0], [0], [1], [0, 0, 1, 1], [], []>} : vector<7x16xf32>, vector<16x8xf32>, vector<7x8xf32> -> vector<7x8xf32>
    %135 = vector.extract_strided_slice %134 {offsets = [0, 0], sizes = [3, 8], strides = [1, 1]} : vector<7x8xf32> to vector<3x8xf32>
    %136 = arith.subf %135, %67 : vector<3x8xf32>
    %c0_59 = arith.constant 0 : index
    %c3_60 = arith.constant 3 : index
    %c0_61 = arith.constant 0 : index
    %c0_62 = arith.constant 0 : index
    %137 = vector.load %arg6[%c0_59, %c3_60, %c0_61, %c0_62] : memref<1x4x7x8xf32, #tpu.memory_space<vmem>>, vector<1x1x3x8xf32>
    %138 = vector.shape_cast %137 : vector<1x1x3x8xf32> to vector<3x8xf32>
    %139 = vector.shape_cast %136 : vector<3x8xf32> to vector<1x1x3x8xf32>
    tpu.vector_store %arg6[%c0_59, %c3_60, %c0_61, %c0_62], %139 {strides = array<i32>} : memref<1x4x7x8xf32, #tpu.memory_space<vmem>>, vector<1x1x3x8xf32>,
    %140 = vector.extract_strided_slice %134 {offsets = [3, 0], sizes = [4, 8], strides = [1, 1]} : vector<7x8xf32> to vector<4x8xf32>
    %c0_63 = arith.constant 0 : index
    %c3_64 = arith.constant 3 : index
    %c3_65 = arith.constant 3 : index
    %c0_66 = arith.constant 0 : index
    %141 = vector.load %arg6[%c0_63, %c3_64, %c3_65, %c0_66] : memref<1x4x7x8xf32, #tpu.memory_space<vmem>>, vector<1x1x4x8xf32>
    %142 = vector.shape_cast %141 : vector<1x1x4x8xf32> to vector<4x8xf32>
    %143 = vector.shape_cast %140 : vector<4x8xf32> to vector<1x1x4x8xf32>
    tpu.vector_store %arg6[%c0_63, %c3_64, %c3_65, %c0_66], %143 {strides = array<i32>} : memref<1x4x7x8xf32, #tpu.memory_space<vmem>>, vector<1x1x4x8xf32>,
    return
  }
  func.func @transform_0(%arg0: i32, %arg1: i32) -> (i32, i32, i32) {
    %c0_i32 = arith.constant 0 : i32
    %c0_i32_0 = arith.constant 0 : i32
    return %arg0, %arg1, %c0_i32 : i32, i32, i32
  }
  func.func @transform_1(%arg0: i32, %arg1: i32) -> (i32, i32, i32) {
    %c0_i32 = arith.constant 0 : i32
    %c0_i32_0 = arith.constant 0 : i32
    return %arg0, %c0_i32, %arg1 : i32, i32, i32
  }
  func.func @transform_2(%arg0: i32, %arg1: i32) -> (i32, i32, i32) {
    %c0_i32 = arith.constant 0 : i32
    %c0_i32_0 = arith.constant 0 : i32
    %c0_i32_1 = arith.constant 0 : i32
    return %arg0, %c0_i32, %c0_i32_0 : i32, i32, i32
  }
  func.func @transform_3(%arg0: i32, %arg1: i32) -> (i32, i32, i32) {
    %c0_i32 = arith.constant 0 : i32
    %c0_i32_0 = arith.constant 0 : i32
    %c0_i32_1 = arith.constant 0 : i32
    return %arg0, %c0_i32, %c0_i32_0 : i32, i32, i32
  }
  func.func @transform_4(%arg0: i32, %arg1: i32) -> (i32, i32, i32, i32) {
    %c0_i32 = arith.constant 0 : i32
    %c0_i32_0 = arith.constant 0 : i32
    %c0_i32_1 = arith.constant 0 : i32
    return %arg0, %c0_i32, %c0_i32_0, %arg1 : i32, i32, i32, i32
  }
}

</mosaic_0001>

<bundles_post_ra>
// kernel: tpu_custom_call.1
= control target key start
LH: loop header
LB: loop body
LE: loop exit
PB: predicated region body
PF: predicated region fallthrough
CT: control target
= control target key end

     0   :  { %s791_s15 = smov 0   ;;  %s793_s16 = smov 0   ;;  %s852_s0 = inlined_call_operand.vmem [shape: f32[2,8,3], index: 0, kind: input, shape index: {}]   ;;  %s853_s1 = inlined_call_operand.vmem [shape: f32[2,3,8], index: 1, kind: input, shape index: {}]   ;;  %s854_s2 = inlined_call_operand.vmem [shape: f32[2,3,16], index: 2, kind: input, shape index: {}]   ;;  %s855_s3 = inlined_call_operand.vmem [shape: f32[2,7,16], index: 3, kind: input, shape index: {}]   ;;  %s856_s4 = inlined_call_operand.vmem [shape: f32[2,4,7,8], index: 4, kind: output, shape index: {}]  }
   0x1   :  { %s795_s17 = smov 0  }
   0x2 LB: > { %s26_s18 = sadd.s32 1, %s751_s16  ;;  %p658_p0 = scmp.ge.s32.totalorder %s755_s17, 1  ;;  %s755_s17 = sphi %s795_s17, %s14_s17   ;;  %s751_s16 = sphi %s793_s16, %s858_s16   ;;  %s747_s15 = sphi %s791_s15, %s857_s15  }
   0x3   : > { %p28_p1 = scmp.ge.s32.totalorder %s26_s18, 2  ;;  %p212_p2 = scmp.lt.s32.totalorder %s755_s17, 3 }
   0x5   : > { %s860_s18 = smov (%p28_p1, %s26_s18), 0  ;;  %p213_p3 = pnand %p658_p0, %p212_p2 }
   0x6   : > { %p258_p4 = scmp.lt.s32.totalorder (!%p213_p3), %s747_s15, 1  ;;  %s761_s27 = smov (!%p213_p3), 1  }
   0x7   : > { %216 = sbr.rel (%p213_p3) target bundleno = 898 (0x382), region = 36  ;;  %s762_s28 = smov (!%p213_p3), 2  }
   0x8   : > { %s763_s29 = smov (!%p213_p3), 4   ;;  %s764_s30 = smov (!%p213_p3), 8  }
   0xc   : > { %v757_v0 = vmov 0   ;;  %v758_v1 = vmov 2   ;;  %s862_s15 = smov (!%p258_p4, %s747_s15), 1  ;;  %v759_v3 = vmov 1   ;;  %v760_v19 = vmov 0.0  }
   0xd   : > { %729 = vset.pattern.permute.xlu0 %v757_v0  ;;  %731 = vset.pattern.permute.xlu1 %v758_v1  ;;  %s659_s19 = sshll.u32 %s862_s15, 3  ;;  %s660_s23 = sshll.u32 %s862_s15, 2  ;;  %vm323_vm1 = vcmask 7168   ;;  %vm330_vm2 = vcmask 15360   ;;  %vm337_vm3 = vcmask 31744   ;;  %vm344_vm4 = vcmask 64512  }
   0xe   : > { %s264_s22 = scalar_lea.vmem %s852_s0, %s659_s19  ;;  %s275_s26 = scalar_lea.vmem %s854_s2, %s660_s23  ;;  %v765_v40 = vmov 1.0   ;;  %v391_v44 = vlaneseq  ;;  %vm410_vm12 = vcmask 130048  }
   0xf   : > { %v288_v2 = vld [vmem:[%s264_s22] sm:$0xff]  ;;  %s279_s7 = scalar_lea.vmem %s855_s3, %s659_s19  ;;  %s695_s8 = sshll.u32 %s862_s15, 5 }
  0x10   : > { %293 = vperm.xlu0 %729, %v288_v2   ;;  %309 = vperm.xlu1 %731, %v288_v2   ;;  %v289_v5 = vld [vmem:[%s275_s26] sm:$0x7]  ;;  %v392_v47 = vshrl.u32 %v391_v44, 7  ;;  %s271_s11 = scalar_lea.vmem %s853_s1, %s660_s23  ;;  %s287_s14 = scalar_lea.vmem %s856_s4, %s695_s8 }
  0x11   : > { %v296_v6 = vperm.slane %v289_v5, 0  ;;  %v312_v7 = vperm.slane %v289_v5, 2  ;;  %v304_v9 = vperm.slane %v289_v5, 1  ;;  %v290_v54 = vld [vmem:[%s279_s7] sm:$0x7f] }
  0x12   : > { %vm394_vm6 = vcmp.eq.s32.totalorder %v392_v47, 0  ;;  %v403_v55 = vld [vmem:[%s271_s11] sm:$0x7] }
  0x18   : > { %730 = vset.pattern.permute.xlu0 %v759_v3 }
  0x19   : > { %301 = vperm.xlu0 %730, %v288_v2  }
  0x21   : > { %732 = vset.pattern.permute.xlu0 %v758_v1 }
  0x82   : > { %v294_v4 = vpop.permute.xlu0 %293  ;;  %v310_v8 = vpop.permute.xlu1 %309 }
  0x83   : > { %v297_v10 = vsub.f32 %v294_v4, %v296_v6  ;;  %v313_v11 = vsub.f32 %v310_v8, %v312_v7 }
  0x85   : > { %v298_v14 = vmul.f32 %v297_v10, %v297_v10  ;;  %v314_v16 = vmul.f32 %v313_v11, %v313_v11 }
  0x8b   : > { %v302_v12 = vpop.permute.xlu0 %301 }
  0x8c   : > { %v305_v13 = vsub.f32 %v302_v12, %v304_v9 }
  0x8e   : > { %v306_v15 = vmul.f32 %v305_v13, %v305_v13 }
  0x90   : > { %v307_v17 = vadd.f32 %v306_v15, %v298_v14 }
  0x92   : > { %v315_v18 = vadd.f32 %v314_v16, %v307_v17 }
  0x94   : > { %vm316_vm0 = vcmp.lt.f32.partialorder %v315_v18, 0.16 }
  0x95   : > { %v665_v20 = vsel %vm316_vm0, 1.0, %v760_v19 }
  0x96   : > { %320 = vrot.lane.b32.xlu1 %v665_v20, %s761_s27 }
 0x108   : > { %v321_v21 = vpop.permute.xlu1 %320 }
 0x109   : > { %v324_v22 = vsel %vm323_vm1, 0.0, %v321_v21 }
 0x10a   : > { %v325_v23 = vadd.f32 %v665_v20, %v324_v22 }
 0x10c   : > { %327 = vrot.lane.b32.xlu2 %v325_v23, %s762_s28 }
 0x166   : > { %v328_v24 = vpop.permute.xlu2 %327 }
 0x167   : > { %v331_v25 = vsel %vm330_vm2, 0.0, %v328_v24 }
 0x168   : > { %v332_v26 = vadd.f32 %v331_v25, %v325_v23 }
 0x16a   : > { %334 = vrot.lane.b32.xlu2 %v332_v26, %s763_s29 }
 0x1c4   : > { %v335_v27 = vpop.permute.xlu2 %334 }
 0x1c5   : > { %v338_v28 = vsel %vm337_vm3, 0.0, %v335_v27 }
 0x1c6   : > { %v339_v29 = vadd.f32 %v338_v28, %v332_v26 }
 0x1c8   : > { %341 = vrot.lane.b32.xlu1 %v339_v29, %s764_s30 }
 0x23a   : > { %v342_v30 = vpop.permute.xlu1 %341 }
 0x23b   : > { %v345_v31 = vsel %vm344_vm4, 0.0, %v342_v30 }
 0x23c   : > { %v346_v32 = vadd.f32 %v345_v31, %v339_v29 }
 0x23e   : > { %v666_v33 = vadd.f32 -1.0, %v346_v32 }
 0x240   : > { %v348_v34 = vsel %vm316_vm0, %v666_v33, -1.0 }
 0x241   : > { %349 = vxpose.xlu2.b32.start.end [1/1] (short) (narrow) %v348_v34, 16 }
 0x2da   : > { %v365_v35 = vpop.trf.xlu2 }
 0x2db   : > { %v381_v37 = vsel %vm344_vm4, %v365_v35, -inf }
 0x2e2   : > { %v366_v36 = vpop.trf.xlu2 }
 0x2e3   : > { %v382_v38 = vsel %vm344_vm4, %v366_v36, -inf  ;;  %vm405_vm5 = vcmp.eq.f32.partialorder %v366_v36, 0.0  ;;  %vm437_vm4 = vcmask 63491  }
 0x2e4   : > { %v383_v39 = vmax.f32 %v381_v37, %v382_v38  ;;  %669 = vmatpush.msk.msra.mxu0 %vm405_vm5, %v765_v40  ;;  %vm435_vm5 = vcmask 59392  }
 0x2e6   : > { %v384_v41 = vrot.slane %v383_v39, 4 }
 0x2e8   : > { %v385_v42 = vmax.f32 %v383_v39, %v384_v41 }
 0x2ea   : > { %v386_v43 = vrot.slane %v385_v42, 2 }
 0x2ec   : > { %v387_v45 = vmax.f32 %v385_v42, %v386_v43 }
 0x2ee   : > { %v388_v46 = vrot.slane %v387_v45, 1 }
 0x2f0   : > { %v389_v48 = vmax.f32 %v387_v45, %v388_v46 }
 0x2f2   : > { %v390_v49 = vadd.f32 1.0, %v389_v48 }
 0x2f4   : > { %vm439_vm7 = vcmp.gt.f32.partialorder %v390_v49, 1.0  ;;  %vm471_vm8 = vcmp.gt.f32.partialorder %v390_v49, 2.0  ;;  %vm503_vm9 = vcmp.gt.f32.partialorder %v390_v49, 3.0  ;;  %vm396_vm10 = vcmp.le.f32.partialorder %v390_v49, 0.0 }
 0x2f5   : > { %v440_v50 = vsel %vm439_vm7, 1.0, %v760_v19  ;;  %v472_v51 = vsel %vm471_vm8, 2.0, %v760_v19  ;;  %v504_v52 = vsel %vm503_vm9, 3.0, %v760_v19  ;;  %vm399_vm11 = vmand %vm394_vm6, %vm396_vm10 }
 0x2f6   : > { %vm442_vm13 = vcmp.eq.f32.partialorder %v366_v36, %v440_v50  ;;  %vm474_vm14 = vcmp.eq.f32.partialorder %v366_v36, %v472_v51  ;;  %vm506_vm15 = vcmp.eq.f32.partialorder %v366_v36, %v504_v52  ;;  %v401_v53 = vsel %vm399_vm11, 0.0, %v365_v35 }
 0x2f7   : > { %674 = vmatpush.msk.msra.mxu1 %vm442_vm13, %v765_v40  ;;  %681 = vmatpush.msk.msra.mxu2 %vm474_vm14, %v765_v40  ;;  %vm404_vm0 = vcmp.eq.f32.partialorder %v401_v53, 0.0  ;;  %vm441_vm1 = vcmp.eq.f32.partialorder %v401_v53, %v440_v50  ;;  %vm473_vm2 = vcmp.eq.f32.partialorder %v401_v53, %v472_v51  ;;  %vm505_vm3 = vcmp.eq.f32.partialorder %v401_v53, %v504_v52 }
 0x2f8   : > { %688 = vmatpush.msk.msra.mxu3 %vm506_vm15, %v765_v40  ;;  %670 = vmatpush.msk.msra.mxu0 %vm404_vm0, %v765_v40 }
 0x2f9   : > { %675 = vmatpush.msk.msra.mxu1 %vm441_vm1, %v765_v40  ;;  %682 = vmatpush.msk.msra.mxu2 %vm473_vm2, %v765_v40 }
 0x2fa   : > { %689 = vmatpush.msk.msra.mxu3 %vm505_vm3, %v765_v40  ;;  %683 = vmatmul.msk.f32.vlgmr.msra.gmra.mxu2 %vm410_vm12, %v290_v54 }
 0x2fb   : > { %690 = vmatmul.msk.f32.vlgmr.msra.gmra.mxu3 %vm410_vm12, %v290_v54  ;;  %671 = vmatmul.msk.f32.vlgmr.msra.gmra.mxu0 %vm410_vm12, %v290_v54 }
 0x2fc   : > { %676 = vmatmul.msk.f32.vlgmr.msra.gmra.mxu1 %vm410_vm12, %v290_v54 }
 0x378   : > { %v431_v56 = vpop.f32.mrf.mxu0 }
 0x379   : > { %v434_v57 = vsub.f32 %v431_v56, %v403_v55  ;;  %438 = vst.msk [vmem:[%s287_s14] sm:$0x78] %vm437_vm4, %v431_v56  ;;  %v464_v58 = vpop.f32.mrf.mxu1 }
 0x37a   : > { %v467_v59 = vsub.f32 %v464_v58, %v403_v55  ;;  %678 = vst.msk [vmem:[%s287_s14 + $0x8] sm:$0x78] %vm437_vm4, %v464_v58 }
 0x37b   : > { %436 = vst.msk [vmem:[%s287_s14] sm:$0x7] %vm435_vm5, %v434_v57 }
 0x37c   : > { %677 = vst.msk [vmem:[%s287_s14 + $0x8] sm:$0x7] %vm435_vm5, %v467_v59 }
 0x37d   : > { %v496_v60 = vpop.f32.mrf.mxu2 }
 0x37e   : > { %v499_v61 = vsub.f32 %v496_v60, %v403_v55  ;;  %685 = vst.msk [vmem:[%s287_s14 + $0x10] sm:$0x78] %vm437_vm4, %v496_v60  ;;  %v528_v62 = vpop.f32.mrf.mxu3 }
 0x37f   : > { %v531_v63 = vsub.f32 %v528_v62, %v403_v55  ;;  %692 = vst.msk [vmem:[%s287_s14 + $0x18] sm:$0x78] %vm437_vm4, %v528_v62 }
 0x380   : > { %684 = vst.msk [vmem:[%s287_s14 + $0x10] sm:$0x7] %vm435_vm5, %v499_v61 }
 0x381   : > { %691 = vst.msk [vmem:[%s287_s14 + $0x18] sm:$0x7] %vm435_vm5, %v531_v63 }
 0x382 PF: > { %s14_s17 = sadd.s32 1, %s755_s17   ;;  %s857_s15 = smov %s751_s16 }
 0x383   : > { %p11_p5 = scmp.ge.s32.totalorder %s14_s17, 4   ;;  %s858_s16 = smov %s860_s18 }
 0x385   :  { %13 = sbr.rel (!%p11_p5) target bundleno = 2 (0x2), region = 78 }

</bundles_post_ra>
